<compile_context>
chip_gen: v6e
topology: v6e:2x2x1
jax: 0.10.0
libtpu: 0.0.40
codegen_flags: <defaults>
</compile_context>

<pallas_src>
import jax
import jax.numpy as jnp
import numpy as np
from jax import lax
from jax.experimental import pallas as pl
from jax.experimental.pallas import tpu as pltpu

# ----------------------------- config ---------------------------------------
B = 2            # batch
N = 8            # sequence length
E = 32           # emb_size
H = 4            # num_heads
D = E // H       # head dim
LANE = 128       # TPU lane width; kernel operands padded to this
BN = B * N


# ----------------------------- kernel ---------------------------------------
def mha_kernel(x_ref, wqkv_ref, bqkv_ref, wp_ref, bp_ref, o_ref):
    # x_ref    : (B*N, 128)  tokens in rows, emb in first E lanes, rest zero
    # wqkv_ref : (128, 128)  columns = [ Wq/sqrt(E) | Wk | Wv | 0 ], rows >= E zero
    # bqkv_ref : (1, 128)    [ bq/sqrt(E) | bk | bv | 0 ]
    # wp_ref   : (E, 128)    output projection, columns >= E zero
    # bp_ref   : (1, 128)    output bias, columns >= E zero
    x = x_ref[...]

    # fused QKV projection for the whole token batch: one lane-dense MXU pass
    qkv = jnp.dot(x, wqkv_ref[...],
                  preferred_element_type=jnp.float32) + bqkv_ref[...]
    # qkv column layout: [ q (pre-scaled) | k | v | zero pad ], each E wide

    bp = bp_ref[...]                                     # (1, 128)

    for b in range(B):                                   # static unroll (B=2)
        r = b * N
        out_b = jnp.zeros((N, LANE), jnp.float32)
        for h in range(H):                               # static unroll (H=4)
            c = h * D
            qh = qkv[r:r + N, c:c + D]                   # (N, D), scale folded in
            kh = qkv[r:r + N, E + c:E + c + D]           # (N, D)
            vh = qkv[r:r + N, 2 * E + c:2 * E + c + D]   # (N, D)

            # energy = einsum('qd,kd->qk'): contract head dim of both operands
            # directly -- no explicit transpose / XLU relayout.
            energy = lax.dot_general(
                qh, kh, (((1,), (1,)), ((), ())),
                preferred_element_type=jnp.float32)      # (N, N)

            # numerically stable softmax over keys (scale already in q)
            m = jnp.max(energy, axis=-1, keepdims=True)
            p = jnp.exp(energy - m)
            att = p / jnp.sum(p, axis=-1, keepdims=True)

            ctx = jnp.dot(att, vh,
                          preferred_element_type=jnp.float32)   # (N, D)

            # fold head h straight into the padded output projection:
            # removes the lane-axis concat of head outputs entirely.
            out_b = out_b + jnp.dot(ctx, wp_ref[c:c + D, :],
                                    preferred_element_type=jnp.float32)  # (N, 128)

        o_ref[r:r + N, :] = (out_b + bp).astype(o_ref.dtype)


# ----------------------------- wrapper ---------------------------------------
def _fuse_params(params):
    """One-time (host/XLA-side) weight prep: fuse QKV, fold the softmax scale,
    zero-pad everything to a lane-dense 128-wide layout."""
    inv_scale = 1.0 / (float(E) ** 0.5)   # module scales by emb_size ** 0.5

    w_qkv = jnp.zeros((LANE, LANE), jnp.float32)
    w_qkv = w_qkv.at[:E, 0:E].set(params["wq_t"] * inv_scale)
    w_qkv = w_qkv.at[:E, E:2 * E].set(params["wk_t"])
    w_qkv = w_qkv.at[:E, 2 * E:3 * E].set(params["wv_t"])

    b_qkv = jnp.zeros((1, LANE), jnp.float32)
    b_qkv = b_qkv.at[:, 0:E].set(params["bq"] * inv_scale)
    b_qkv = b_qkv.at[:, E:2 * E].set(params["bk"])
    b_qkv = b_qkv.at[:, 2 * E:3 * E].set(params["bv"])

    wp = jnp.zeros((E, LANE), jnp.float32).at[:, :E].set(params["wp_t"])
    bp = jnp.zeros((1, LANE), jnp.float32).at[:, :E].set(params["bp"])
    return w_qkv, b_qkv, wp, bp


def multi_head_attention(x, params):
    """x: (B, N, E) float32. params: dict of transposed torch Linear weights."""
    w_qkv, b_qkv, wp, bp = _fuse_params(params)

    # lane-dense input slab: (B*N, 128), emb in the first E lanes
    x_pad = jnp.zeros((BN, LANE), x.dtype).at[:, :E].set(x.reshape(BN, E))

    out_pad = pl.pallas_call(
        mha_kernel,
        out_shape=jax.ShapeDtypeStruct((BN, LANE), x.dtype),
        grid_spec=pltpu.PrefetchScalarGridSpec(
            num_scalar_prefetch=0,
            grid=(1,),                                   # single step: ~20 KB problem
            in_specs=[
                pl.BlockSpec((BN, LANE), lambda i: (0, 0)),    # x (padded)
                pl.BlockSpec((LANE, LANE), lambda i: (0, 0)),  # fused W_qkv
                pl.BlockSpec((1, LANE), lambda i: (0, 0)),     # fused b_qkv
                pl.BlockSpec((E, LANE), lambda i: (0, 0)),     # W_proj (padded)
                pl.BlockSpec((1, LANE), lambda i: (0, 0)),     # b_proj (padded)
            ],
            out_specs=pl.BlockSpec((BN, LANE), lambda i: (0, 0)),
        ),
        compiler_params=pltpu.CompilerParams(
            dimension_semantics=("arbitrary",)),
    )(x_pad, w_qkv, b_qkv, wp, bp)

    return out_pad[:, :E].reshape(B, N, E)


# ----------------------------- reference (pure JAX) ---------------------------
def mha_reference(x, params):
    q = x @ params["wq_t"] + params["bq"][0]
    k = x @ params["wk_t"] + params["bk"][0]
    v = x @ params["wv_t"] + params["bv"][0]

    def split(t):
        return t.reshape(B, N, H, D).transpose(0, 2, 1, 3)

    qh, kh, vh = split(q), split(k), split(v)
    energy = jnp.einsum("bhqd,bhkd->bhqk", qh, kh)
    att = jax.nn.softmax(energy / (E ** 0.5), axis=-1)
    out = jnp.einsum("bhal,bhlv->bhav", att, vh)
    out = out.transpose(0, 2, 1, 3).reshape(B, N, E)
    return out @ params["wp_t"] + params["bp"][0]


# ----------------------------- main -------------------------------------------
if __name__ == "__main__":
    key = jax.random.PRNGKey(0)
    keys = jax.random.split(key, 9)

    bound = 1.0 / np.sqrt(E)  # PyTorch nn.Linear default init range

    def lin_w(k):   # stored as (E_out, E_in) like torch, then transposed
        w = jax.random.uniform(k, (E, E), jnp.float32, -bound, bound)
        return w.T  # (E_in, E_out)

    def lin_b(k):
        return jax.random.uniform(k, (1, E), jnp.float32, -bound, bound)

    params = {
        "wq_t": lin_w(keys[0]), "bq": lin_b(keys[1]),
        "wk_t": lin_w(keys[2]), "bk": lin_b(keys[3]),
        "wv_t": lin_w(keys[4]), "bv": lin_b(keys[5]),
        "wp_t": lin_w(keys[6]), "bp": lin_b(keys[7]),
    }

    x = jax.random.normal(keys[8], (B, N, E), jnp.float32)

    out = jax.block_until_ready(multi_head_attention(x, params))
    ref = jax.block_until_ready(mha_reference(x, params))

    np.testing.assert_allclose(np.asarray(out), np.asarray(ref),
                               rtol=1e-5, atol=1e-5)

    print("KERNEL_OK")
</pallas_src>

<mosaic_0001>
module attributes {stable_mosaic.version = 11 : i64} {
  func.func @mha_kernel(%arg0: i32, %arg1: memref<16x128xf32, #tpu.memory_space<vmem>>, %arg2: memref<128x128xf32, #tpu.memory_space<vmem>>, %arg3: memref<1x128xf32, #tpu.memory_space<vmem>>, %arg4: memref<32x128xf32, #tpu.memory_space<vmem>>, %arg5: memref<1x128xf32, #tpu.memory_space<vmem>>, %arg6: memref<16x128xf32, #tpu.memory_space<vmem>>) attributes {dimension_semantics = [#tpu.dimension_semantics<arbitrary>], iteration_bounds = array<i64: 1>, scalar_prefetch = 0 : i64, scratch_operands = 0 : i64, tpu.core_type = #tpu.core_type<tc>, window_params = [{pipeline_mode = #tpu.pipeline_mode<synchronous>, transform_indices = @transform_0, window_bounds = array<i64: 16, 128>}, {pipeline_mode = #tpu.pipeline_mode<synchronous>, transform_indices = @transform_1, window_bounds = array<i64: 128, 128>}, {pipeline_mode = #tpu.pipeline_mode<synchronous>, transform_indices = @transform_2, window_bounds = array<i64: 1, 128>}, {pipeline_mode = #tpu.pipeline_mode<synchronous>, transform_indices = @transform_3, window_bounds = array<i64: 32, 128>}, {pipeline_mode = #tpu.pipeline_mode<synchronous>, transform_indices = @transform_4, window_bounds = array<i64: 1, 128>}, {pipeline_mode = #tpu.pipeline_mode<synchronous>, transform_indices = @transform_5, window_bounds = array<i64: 16, 128>}]} {
    %c0 = arith.constant 0 : index
    %c0_0 = arith.constant 0 : index
    %0 = vector.load %arg1[%c0, %c0_0] : memref<16x128xf32, #tpu.memory_space<vmem>>, vector<16x128xf32>
    %c0_1 = arith.constant 0 : index
    %c0_2 = arith.constant 0 : index
    %1 = vector.load %arg2[%c0_1, %c0_2] : memref<128x128xf32, #tpu.memory_space<vmem>>, vector<128x128xf32>
    %cst = arith.constant dense<0.000000e+00> : vector<16x128xf32>
    %2 = tpu.matmul %0, %1, %cst {dimension_numbers = #tpu.dot_dimension_numbers<[1], [0], [0], [1], [0, 0, 1, 1], [], []>} : vector<16x128xf32>, vector<128x128xf32>, vector<16x128xf32> -> vector<16x128xf32>
    %c0_3 = arith.constant 0 : index
    %c0_4 = arith.constant 0 : index
    %3 = vector.load %arg3[%c0_3, %c0_4] : memref<1x128xf32, #tpu.memory_space<vmem>>, vector<1x128xf32>
    %4 = vector.broadcast %3 : vector<1x128xf32> to vector<16x128xf32>
    %5 = arith.addf %2, %4 : vector<16x128xf32>
    %c0_5 = arith.constant 0 : index
    %c0_6 = arith.constant 0 : index
    %6 = vector.load %arg5[%c0_5, %c0_6] : memref<1x128xf32, #tpu.memory_space<vmem>>, vector<1x128xf32>
    %cst_7 = arith.constant 0.000000e+00 : f32
    %7 = vector.broadcast %cst_7 : f32 to vector<8x128xf32>
    %8 = vector.extract_strided_slice %5 {offsets = [0, 0], sizes = [8, 8], strides = [1, 1]} : vector<16x128xf32> to vector<8x8xf32>
    %9 = vector.extract_strided_slice %5 {offsets = [0, 32], sizes = [8, 8], strides = [1, 1]} : vector<16x128xf32> to vector<8x8xf32>
    %10 = vector.extract_strided_slice %5 {offsets = [0, 64], sizes = [8, 8], strides = [1, 1]} : vector<16x128xf32> to vector<8x8xf32>
    %cst_8 = arith.constant dense<0.000000e+00> : vector<8x8xf32>
    %11 = tpu.matmul %8, %9, %cst_8 {dimension_numbers = #tpu.dot_dimension_numbers<[1], [1], [0], [0], [0, 0, 1, 0], [], []>} : vector<8x8xf32>, vector<8x8xf32>, vector<8x8xf32> -> vector<8x8xf32>
    %cst_9 = arith.constant dense<0xFF800000> : vector<8xf32>
    %12 = vector.multi_reduction <maximumf>, %11, %cst_9 [1] : vector<8x8xf32> to vector<8xf32>
    %13 = vector.shape_cast %12 : vector<8xf32> to vector<8x1xf32>
    %14 = vector.broadcast %13 : vector<8x1xf32> to vector<8x8xf32>
    %15 = arith.subf %11, %14 : vector<8x8xf32>
    %16 = math.exp %15 : vector<8x8xf32>
    %cst_10 = arith.constant dense<0.000000e+00> : vector<8xf32>
    %17 = vector.multi_reduction <add>, %16, %cst_10 [1] : vector<8x8xf32> to vector<8xf32>
    %18 = vector.shape_cast %17 : vector<8xf32> to vector<8x1xf32>
    %19 = vector.broadcast %18 : vector<8x1xf32> to vector<8x8xf32>
    %20 = arith.divf %16, %19 : vector<8x8xf32>
    %cst_11 = arith.constant dense<0.000000e+00> : vector<8x8xf32>
    %21 = tpu.matmul %20, %10, %cst_11 {dimension_numbers = #tpu.dot_dimension_numbers<[1], [0], [0], [1], [0, 0, 1, 1], [], []>} : vector<8x8xf32>, vector<8x8xf32>, vector<8x8xf32> -> vector<8x8xf32>
    %c0_12 = arith.constant 0 : index
    %c0_13 = arith.constant 0 : index
    %22 = vector.load %arg4[%c0_12, %c0_13] : memref<32x128xf32, #tpu.memory_space<vmem>>, vector<8x128xf32>
    %cst_14 = arith.constant dense<0.000000e+00> : vector<8x128xf32>
    %23 = tpu.matmul %21, %22, %cst_14 {dimension_numbers = #tpu.dot_dimension_numbers<[1], [0], [0], [1], [0, 0, 1, 1], [], []>} : vector<8x8xf32>, vector<8x128xf32>, vector<8x128xf32> -> vector<8x128xf32>
    %24 = arith.addf %7, %23 : vector<8x128xf32>
    %25 = vector.extract_strided_slice %5 {offsets = [0, 8], sizes = [8, 8], strides = [1, 1]} : vector<16x128xf32> to vector<8x8xf32>
    %26 = vector.extract_strided_slice %5 {offsets = [0, 40], sizes = [8, 8], strides = [1, 1]} : vector<16x128xf32> to vector<8x8xf32>
    %27 = vector.extract_strided_slice %5 {offsets = [0, 72], sizes = [8, 8], strides = [1, 1]} : vector<16x128xf32> to vector<8x8xf32>
    %cst_15 = arith.constant dense<0.000000e+00> : vector<8x8xf32>
    %28 = tpu.matmul %25, %26, %cst_15 {dimension_numbers = #tpu.dot_dimension_numbers<[1], [1], [0], [0], [0, 0, 1, 0], [], []>} : vector<8x8xf32>, vector<8x8xf32>, vector<8x8xf32> -> vector<8x8xf32>
    %cst_16 = arith.constant dense<0xFF800000> : vector<8xf32>
    %29 = vector.multi_reduction <maximumf>, %28, %cst_16 [1] : vector<8x8xf32> to vector<8xf32>
    %30 = vector.shape_cast %29 : vector<8xf32> to vector<8x1xf32>
    %31 = vector.broadcast %30 : vector<8x1xf32> to vector<8x8xf32>
    %32 = arith.subf %28, %31 : vector<8x8xf32>
    %33 = math.exp %32 : vector<8x8xf32>
    %cst_17 = arith.constant dense<0.000000e+00> : vector<8xf32>
    %34 = vector.multi_reduction <add>, %33, %cst_17 [1] : vector<8x8xf32> to vector<8xf32>
    %35 = vector.shape_cast %34 : vector<8xf32> to vector<8x1xf32>
    %36 = vector.broadcast %35 : vector<8x1xf32> to vector<8x8xf32>
    %37 = arith.divf %33, %36 : vector<8x8xf32>
    %cst_18 = arith.constant dense<0.000000e+00> : vector<8x8xf32>
    %38 = tpu.matmul %37, %27, %cst_18 {dimension_numbers = #tpu.dot_dimension_numbers<[1], [0], [0], [1], [0, 0, 1, 1], [], []>} : vector<8x8xf32>, vector<8x8xf32>, vector<8x8xf32> -> vector<8x8xf32>
    %c8 = arith.constant 8 : index
    %c0_19 = arith.constant 0 : index
    %39 = vector.load %arg4[%c8, %c0_19] : memref<32x128xf32, #tpu.memory_space<vmem>>, vector<8x128xf32>
    %cst_20 = arith.constant dense<0.000000e+00> : vector<8x128xf32>
    %40 = tpu.matmul %38, %39, %cst_20 {dimension_numbers = #tpu.dot_dimension_numbers<[1], [0], [0], [1], [0, 0, 1, 1], [], []>} : vector<8x8xf32>, vector<8x128xf32>, vector<8x128xf32> -> vector<8x128xf32>
    %41 = arith.addf %24, %40 : vector<8x128xf32>
    %42 = vector.extract_strided_slice %5 {offsets = [0, 16], sizes = [8, 8], strides = [1, 1]} : vector<16x128xf32> to vector<8x8xf32>
    %43 = vector.extract_strided_slice %5 {offsets = [0, 48], sizes = [8, 8], strides = [1, 1]} : vector<16x128xf32> to vector<8x8xf32>
    %44 = vector.extract_strided_slice %5 {offsets = [0, 80], sizes = [8, 8], strides = [1, 1]} : vector<16x128xf32> to vector<8x8xf32>
    %cst_21 = arith.constant dense<0.000000e+00> : vector<8x8xf32>
    %45 = tpu.matmul %42, %43, %cst_21 {dimension_numbers = #tpu.dot_dimension_numbers<[1], [1], [0], [0], [0, 0, 1, 0], [], []>} : vector<8x8xf32>, vector<8x8xf32>, vector<8x8xf32> -> vector<8x8xf32>
    %cst_22 = arith.constant dense<0xFF800000> : vector<8xf32>
    %46 = vector.multi_reduction <maximumf>, %45, %cst_22 [1] : vector<8x8xf32> to vector<8xf32>
    %47 = vector.shape_cast %46 : vector<8xf32> to vector<8x1xf32>
    %48 = vector.broadcast %47 : vector<8x1xf32> to vector<8x8xf32>
    %49 = arith.subf %45, %48 : vector<8x8xf32>
    %50 = math.exp %49 : vector<8x8xf32>
    %cst_23 = arith.constant dense<0.000000e+00> : vector<8xf32>
    %51 = vector.multi_reduction <add>, %50, %cst_23 [1] : vector<8x8xf32> to vector<8xf32>
    %52 = vector.shape_cast %51 : vector<8xf32> to vector<8x1xf32>
    %53 = vector.broadcast %52 : vector<8x1xf32> to vector<8x8xf32>
    %54 = arith.divf %50, %53 : vector<8x8xf32>
    %cst_24 = arith.constant dense<0.000000e+00> : vector<8x8xf32>
    %55 = tpu.matmul %54, %44, %cst_24 {dimension_numbers = #tpu.dot_dimension_numbers<[1], [0], [0], [1], [0, 0, 1, 1], [], []>} : vector<8x8xf32>, vector<8x8xf32>, vector<8x8xf32> -> vector<8x8xf32>
    %c16 = arith.constant 16 : index
    %c0_25 = arith.constant 0 : index
    %56 = vector.load %arg4[%c16, %c0_25] : memref<32x128xf32, #tpu.memory_space<vmem>>, vector<8x128xf32>
    %cst_26 = arith.constant dense<0.000000e+00> : vector<8x128xf32>
    %57 = tpu.matmul %55, %56, %cst_26 {dimension_numbers = #tpu.dot_dimension_numbers<[1], [0], [0], [1], [0, 0, 1, 1], [], []>} : vector<8x8xf32>, vector<8x128xf32>, vector<8x128xf32> -> vector<8x128xf32>
    %58 = arith.addf %41, %57 : vector<8x128xf32>
    %59 = vector.extract_strided_slice %5 {offsets = [0, 24], sizes = [8, 8], strides = [1, 1]} : vector<16x128xf32> to vector<8x8xf32>
    %60 = vector.extract_strided_slice %5 {offsets = [0, 56], sizes = [8, 8], strides = [1, 1]} : vector<16x128xf32> to vector<8x8xf32>
    %61 = vector.extract_strided_slice %5 {offsets = [0, 88], sizes = [8, 8], strides = [1, 1]} : vector<16x128xf32> to vector<8x8xf32>
    %cst_27 = arith.constant dense<0.000000e+00> : vector<8x8xf32>
    %62 = tpu.matmul %59, %60, %cst_27 {dimension_numbers = #tpu.dot_dimension_numbers<[1], [1], [0], [0], [0, 0, 1, 0], [], []>} : vector<8x8xf32>, vector<8x8xf32>, vector<8x8xf32> -> vector<8x8xf32>
    %cst_28 = arith.constant dense<0xFF800000> : vector<8xf32>
    %63 = vector.multi_reduction <maximumf>, %62, %cst_28 [1] : vector<8x8xf32> to vector<8xf32>
    %64 = vector.shape_cast %63 : vector<8xf32> to vector<8x1xf32>
    %65 = vector.broadcast %64 : vector<8x1xf32> to vector<8x8xf32>
    %66 = arith.subf %62, %65 : vector<8x8xf32>
    %67 = math.exp %66 : vector<8x8xf32>
    %cst_29 = arith.constant dense<0.000000e+00> : vector<8xf32>
    %68 = vector.multi_reduction <add>, %67, %cst_29 [1] : vector<8x8xf32> to vector<8xf32>
    %69 = vector.shape_cast %68 : vector<8xf32> to vector<8x1xf32>
    %70 = vector.broadcast %69 : vector<8x1xf32> to vector<8x8xf32>
    %71 = arith.divf %67, %70 : vector<8x8xf32>
    %cst_30 = arith.constant dense<0.000000e+00> : vector<8x8xf32>
    %72 = tpu.matmul %71, %61, %cst_30 {dimension_numbers = #tpu.dot_dimension_numbers<[1], [0], [0], [1], [0, 0, 1, 1], [], []>} : vector<8x8xf32>, vector<8x8xf32>, vector<8x8xf32> -> vector<8x8xf32>
    %c24 = arith.constant 24 : index
    %c0_31 = arith.constant 0 : index
    %73 = vector.load %arg4[%c24, %c0_31] : memref<32x128xf32, #tpu.memory_space<vmem>>, vector<8x128xf32>
    %cst_32 = arith.constant dense<0.000000e+00> : vector<8x128xf32>
    %74 = tpu.matmul %72, %73, %cst_32 {dimension_numbers = #tpu.dot_dimension_numbers<[1], [0], [0], [1], [0, 0, 1, 1], [], []>} : vector<8x8xf32>, vector<8x128xf32>, vector<8x128xf32> -> vector<8x128xf32>
    %75 = arith.addf %58, %74 : vector<8x128xf32>
    %76 = vector.broadcast %6 : vector<1x128xf32> to vector<8x128xf32>
    %77 = arith.addf %75, %76 : vector<8x128xf32>
    %c0_33 = arith.constant 0 : index
    %c0_34 = arith.constant 0 : index
    %78 = vector.load %arg6[%c0_33, %c0_34] : memref<16x128xf32, #tpu.memory_space<vmem>>, vector<8x128xf32>
    tpu.vector_store %arg6[%c0_33, %c0_34], %77 {strides = array<i32>} : memref<16x128xf32, #tpu.memory_space<vmem>>, vector<8x128xf32>,
    %cst_35 = arith.constant 0.000000e+00 : f32
    %79 = vector.broadcast %cst_35 : f32 to vector<8x128xf32>
    %80 = vector.extract_strided_slice %5 {offsets = [8, 0], sizes = [8, 8], strides = [1, 1]} : vector<16x128xf32> to vector<8x8xf32>
    %81 = vector.extract_strided_slice %5 {offsets = [8, 32], sizes = [8, 8], strides = [1, 1]} : vector<16x128xf32> to vector<8x8xf32>
    %82 = vector.extract_strided_slice %5 {offsets = [8, 64], sizes = [8, 8], strides = [1, 1]} : vector<16x128xf32> to vector<8x8xf32>
    %cst_36 = arith.constant dense<0.000000e+00> : vector<8x8xf32>
    %83 = tpu.matmul %80, %81, %cst_36 {dimension_numbers = #tpu.dot_dimension_numbers<[1], [1], [0], [0], [0, 0, 1, 0], [], []>} : vector<8x8xf32>, vector<8x8xf32>, vector<8x8xf32> -> vector<8x8xf32>
    %cst_37 = arith.constant dense<0xFF800000> : vector<8xf32>
    %84 = vector.multi_reduction <maximumf>, %83, %cst_37 [1] : vector<8x8xf32> to vector<8xf32>
    %85 = vector.shape_cast %84 : vector<8xf32> to vector<8x1xf32>
    %86 = vector.broadcast %85 : vector<8x1xf32> to vector<8x8xf32>
    %87 = arith.subf %83, %86 : vector<8x8xf32>
    %88 = math.exp %87 : vector<8x8xf32>
    %cst_38 = arith.constant dense<0.000000e+00> : vector<8xf32>
    %89 = vector.multi_reduction <add>, %88, %cst_38 [1] : vector<8x8xf32> to vector<8xf32>
    %90 = vector.shape_cast %89 : vector<8xf32> to vector<8x1xf32>
    %91 = vector.broadcast %90 : vector<8x1xf32> to vector<8x8xf32>
    %92 = arith.divf %88, %91 : vector<8x8xf32>
    %cst_39 = arith.constant dense<0.000000e+00> : vector<8x8xf32>
    %93 = tpu.matmul %92, %82, %cst_39 {dimension_numbers = #tpu.dot_dimension_numbers<[1], [0], [0], [1], [0, 0, 1, 1], [], []>} : vector<8x8xf32>, vector<8x8xf32>, vector<8x8xf32> -> vector<8x8xf32>
    %c0_40 = arith.constant 0 : index
    %c0_41 = arith.constant 0 : index
    %94 = vector.load %arg4[%c0_40, %c0_41] : memref<32x128xf32, #tpu.memory_space<vmem>>, vector<8x128xf32>
    %cst_42 = arith.constant dense<0.000000e+00> : vector<8x128xf32>
    %95 = tpu.matmul %93, %94, %cst_42 {dimension_numbers = #tpu.dot_dimension_numbers<[1], [0], [0], [1], [0, 0, 1, 1], [], []>} : vector<8x8xf32>, vector<8x128xf32>, vector<8x128xf32> -> vector<8x128xf32>
    %96 = arith.addf %79, %95 : vector<8x128xf32>
    %97 = vector.extract_strided_slice %5 {offsets = [8, 8], sizes = [8, 8], strides = [1, 1]} : vector<16x128xf32> to vector<8x8xf32>
    %98 = vector.extract_strided_slice %5 {offsets = [8, 40], sizes = [8, 8], strides = [1, 1]} : vector<16x128xf32> to vector<8x8xf32>
    %99 = vector.extract_strided_slice %5 {offsets = [8, 72], sizes = [8, 8], strides = [1, 1]} : vector<16x128xf32> to vector<8x8xf32>
    %cst_43 = arith.constant dense<0.000000e+00> : vector<8x8xf32>
    %100 = tpu.matmul %97, %98, %cst_43 {dimension_numbers = #tpu.dot_dimension_numbers<[1], [1], [0], [0], [0, 0, 1, 0], [], []>} : vector<8x8xf32>, vector<8x8xf32>, vector<8x8xf32> -> vector<8x8xf32>
    %cst_44 = arith.constant dense<0xFF800000> : vector<8xf32>
    %101 = vector.multi_reduction <maximumf>, %100, %cst_44 [1] : vector<8x8xf32> to vector<8xf32>
    %102 = vector.shape_cast %101 : vector<8xf32> to vector<8x1xf32>
    %103 = vector.broadcast %102 : vector<8x1xf32> to vector<8x8xf32>
    %104 = arith.subf %100, %103 : vector<8x8xf32>
    %105 = math.exp %104 : vector<8x8xf32>
    %cst_45 = arith.constant dense<0.000000e+00> : vector<8xf32>
    %106 = vector.multi_reduction <add>, %105, %cst_45 [1] : vector<8x8xf32> to vector<8xf32>
    %107 = vector.shape_cast %106 : vector<8xf32> to vector<8x1xf32>
    %108 = vector.broadcast %107 : vector<8x1xf32> to vector<8x8xf32>
    %109 = arith.divf %105, %108 : vector<8x8xf32>
    %cst_46 = arith.constant dense<0.000000e+00> : vector<8x8xf32>
    %110 = tpu.matmul %109, %99, %cst_46 {dimension_numbers = #tpu.dot_dimension_numbers<[1], [0], [0], [1], [0, 0, 1, 1], [], []>} : vector<8x8xf32>, vector<8x8xf32>, vector<8x8xf32> -> vector<8x8xf32>
    %c8_47 = arith.constant 8 : index
    %c0_48 = arith.constant 0 : index
    %111 = vector.load %arg4[%c8_47, %c0_48] : memref<32x128xf32, #tpu.memory_space<vmem>>, vector<8x128xf32>
    %cst_49 = arith.constant dense<0.000000e+00> : vector<8x128xf32>
    %112 = tpu.matmul %110, %111, %cst_49 {dimension_numbers = #tpu.dot_dimension_numbers<[1], [0], [0], [1], [0, 0, 1, 1], [], []>} : vector<8x8xf32>, vector<8x128xf32>, vector<8x128xf32> -> vector<8x128xf32>
    %113 = arith.addf %96, %112 : vector<8x128xf32>
    %114 = vector.extract_strided_slice %5 {offsets = [8, 16], sizes = [8, 8], strides = [1, 1]} : vector<16x128xf32> to vector<8x8xf32>
    %115 = vector.extract_strided_slice %5 {offsets = [8, 48], sizes = [8, 8], strides = [1, 1]} : vector<16x128xf32> to vector<8x8xf32>
    %116 = vector.extract_strided_slice %5 {offsets = [8, 80], sizes = [8, 8], strides = [1, 1]} : vector<16x128xf32> to vector<8x8xf32>
    %cst_50 = arith.constant dense<0.000000e+00> : vector<8x8xf32>
    %117 = tpu.matmul %114, %115, %cst_50 {dimension_numbers = #tpu.dot_dimension_numbers<[1], [1], [0], [0], [0, 0, 1, 0], [], []>} : vector<8x8xf32>, vector<8x8xf32>, vector<8x8xf32> -> vector<8x8xf32>
    %cst_51 = arith.constant dense<0xFF800000> : vector<8xf32>
    %118 = vector.multi_reduction <maximumf>, %117, %cst_51 [1] : vector<8x8xf32> to vector<8xf32>
    %119 = vector.shape_cast %118 : vector<8xf32> to vector<8x1xf32>
    %120 = vector.broadcast %119 : vector<8x1xf32> to vector<8x8xf32>
    %121 = arith.subf %117, %120 : vector<8x8xf32>
    %122 = math.exp %121 : vector<8x8xf32>
    %cst_52 = arith.constant dense<0.000000e+00> : vector<8xf32>
    %123 = vector.multi_reduction <add>, %122, %cst_52 [1] : vector<8x8xf32> to vector<8xf32>
    %124 = vector.shape_cast %123 : vector<8xf32> to vector<8x1xf32>
    %125 = vector.broadcast %124 : vector<8x1xf32> to vector<8x8xf32>
    %126 = arith.divf %122, %125 : vector<8x8xf32>
    %cst_53 = arith.constant dense<0.000000e+00> : vector<8x8xf32>
    %127 = tpu.matmul %126, %116, %cst_53 {dimension_numbers = #tpu.dot_dimension_numbers<[1], [0], [0], [1], [0, 0, 1, 1], [], []>} : vector<8x8xf32>, vector<8x8xf32>, vector<8x8xf32> -> vector<8x8xf32>
    %c16_54 = arith.constant 16 : index
    %c0_55 = arith.constant 0 : index
    %128 = vector.load %arg4[%c16_54, %c0_55] : memref<32x128xf32, #tpu.memory_space<vmem>>, vector<8x128xf32>
    %cst_56 = arith.constant dense<0.000000e+00> : vector<8x128xf32>
    %129 = tpu.matmul %127, %128, %cst_56 {dimension_numbers = #tpu.dot_dimension_numbers<[1], [0], [0], [1], [0, 0, 1, 1], [], []>} : vector<8x8xf32>, vector<8x128xf32>, vector<8x128xf32> -> vector<8x128xf32>
    %130 = arith.addf %113, %129 : vector<8x128xf32>
    %131 = vector.extract_strided_slice %5 {offsets = [8, 24], sizes = [8, 8], strides = [1, 1]} : vector<16x128xf32> to vector<8x8xf32>
    %132 = vector.extract_strided_slice %5 {offsets = [8, 56], sizes = [8, 8], strides = [1, 1]} : vector<16x128xf32> to vector<8x8xf32>
    %133 = vector.extract_strided_slice %5 {offsets = [8, 88], sizes = [8, 8], strides = [1, 1]} : vector<16x128xf32> to vector<8x8xf32>
    %cst_57 = arith.constant dense<0.000000e+00> : vector<8x8xf32>
    %134 = tpu.matmul %131, %132, %cst_57 {dimension_numbers = #tpu.dot_dimension_numbers<[1], [1], [0], [0], [0, 0, 1, 0], [], []>} : vector<8x8xf32>, vector<8x8xf32>, vector<8x8xf32> -> vector<8x8xf32>
    %cst_58 = arith.constant dense<0xFF800000> : vector<8xf32>
    %135 = vector.multi_reduction <maximumf>, %134, %cst_58 [1] : vector<8x8xf32> to vector<8xf32>
    %136 = vector.shape_cast %135 : vector<8xf32> to vector<8x1xf32>
    %137 = vector.broadcast %136 : vector<8x1xf32> to vector<8x8xf32>
    %138 = arith.subf %134, %137 : vector<8x8xf32>
    %139 = math.exp %138 : vector<8x8xf32>
    %cst_59 = arith.constant dense<0.000000e+00> : vector<8xf32>
    %140 = vector.multi_reduction <add>, %139, %cst_59 [1] : vector<8x8xf32> to vector<8xf32>
    %141 = vector.shape_cast %140 : vector<8xf32> to vector<8x1xf32>
    %142 = vector.broadcast %141 : vector<8x1xf32> to vector<8x8xf32>
    %143 = arith.divf %139, %142 : vector<8x8xf32>
    %cst_60 = arith.constant dense<0.000000e+00> : vector<8x8xf32>
    %144 = tpu.matmul %143, %133, %cst_60 {dimension_numbers = #tpu.dot_dimension_numbers<[1], [0], [0], [1], [0, 0, 1, 1], [], []>} : vector<8x8xf32>, vector<8x8xf32>, vector<8x8xf32> -> vector<8x8xf32>
    %c24_61 = arith.constant 24 : index
    %c0_62 = arith.constant 0 : index
    %145 = vector.load %arg4[%c24_61, %c0_62] : memref<32x128xf32, #tpu.memory_space<vmem>>, vector<8x128xf32>
    %cst_63 = arith.constant dense<0.000000e+00> : vector<8x128xf32>
    %146 = tpu.matmul %144, %145, %cst_63 {dimension_numbers = #tpu.dot_dimension_numbers<[1], [0], [0], [1], [0, 0, 1, 1], [], []>} : vector<8x8xf32>, vector<8x128xf32>, vector<8x128xf32> -> vector<8x128xf32>
    %147 = arith.addf %130, %146 : vector<8x128xf32>
    %148 = vector.broadcast %6 : vector<1x128xf32> to vector<8x128xf32>
    %149 = arith.addf %147, %148 : vector<8x128xf32>
    %c8_64 = arith.constant 8 : index
    %c0_65 = arith.constant 0 : index
    %150 = vector.load %arg6[%c8_64, %c0_65] : memref<16x128xf32, #tpu.memory_space<vmem>>, vector<8x128xf32>
    tpu.vector_store %arg6[%c8_64, %c0_65], %149 {strides = array<i32>} : memref<16x128xf32, #tpu.memory_space<vmem>>, vector<8x128xf32>,
    return
  }
  func.func @transform_0(%arg0: i32) -> (i32, i32) {
    %c0_i32 = arith.constant 0 : i32
    %c0_i32_0 = arith.constant 0 : i32
    %c0_i32_1 = arith.constant 0 : i32
    return %c0_i32, %c0_i32_0 : i32, i32
  }
  func.func @transform_1(%arg0: i32) -> (i32, i32) {
    %c0_i32 = arith.constant 0 : i32
    %c0_i32_0 = arith.constant 0 : i32
    %c0_i32_1 = arith.constant 0 : i32
    return %c0_i32, %c0_i32_0 : i32, i32
  }
  func.func @transform_2(%arg0: i32) -> (i32, i32) {
    %c0_i32 = arith.constant 0 : i32
    %c0_i32_0 = arith.constant 0 : i32
    %c0_i32_1 = arith.constant 0 : i32
    return %c0_i32, %c0_i32_0 : i32, i32
  }
  func.func @transform_3(%arg0: i32) -> (i32, i32) {
    %c0_i32 = arith.constant 0 : i32
    %c0_i32_0 = arith.constant 0 : i32
    %c0_i32_1 = arith.constant 0 : i32
    return %c0_i32, %c0_i32_0 : i32, i32
  }
  func.func @transform_4(%arg0: i32) -> (i32, i32) {
    %c0_i32 = arith.constant 0 : i32
    %c0_i32_0 = arith.constant 0 : i32
    %c0_i32_1 = arith.constant 0 : i32
    return %c0_i32, %c0_i32_0 : i32, i32
  }
  func.func @transform_5(%arg0: i32) -> (i32, i32) {
    %c0_i32 = arith.constant 0 : i32
    %c0_i32_0 = arith.constant 0 : i32
    %c0_i32_1 = arith.constant 0 : i32
    return %c0_i32, %c0_i32_0 : i32, i32
  }
}

</mosaic_0001>

<bundles_post_ra>
// kernel: tpu_custom_call.1
= control target key start
LH: loop header
LB: loop body
LE: loop exit
PB: predicated region body
PF: predicated region fallthrough
CT: control target
= control target key end

     0   :  { %10 = vsyncpa [#allocation3], 0  ;;  %s2767_s0 = inlined_call_operand.hbm [shape: f32[16,128], index: 0, kind: input, shape index: {}]   ;;  %s2768_s1 = inlined_call_operand.hbm [shape: f32[128,128], index: 1, kind: input, shape index: {}]   ;;  %s2769_s2 = inlined_call_operand.vmem [shape: f32[1,128], index: 2, kind: input, shape index: {}]   ;;  %s2770_s3 = inlined_call_operand.hbm [shape: f32[32,128], index: 3, kind: input, shape index: {}]   ;;  %s2771_s4 = inlined_call_operand.vmem [shape: f32[1,128], index: 4, kind: input, shape index: {}]   ;;  %s2772_s5 = inlined_call_operand.hbm [shape: f32[16,128], index: 5, kind: output, shape index: {}]  }
   0x1   :  { %11 = vsyncpa [#allocation6], 0 }
   0x2   :  { %12 = vsyncpa [#allocation4], 0  ;;  %s2498_s18 = smov [#allocation5]   ;;  %s2499_s20 = smov [#allocation2]  }
   0x3   :  { %s30_s19 = sshll.u32 %s2498_s18, 4  ;;  %s18_s21 = sshll.u32 %s2499_s20, 4  ;;  %s31_s19 = int_to_ptr.vmem [resolvable:$true] %s30_s19  ;;  %s19_s21 = int_to_ptr.vmem [resolvable:$true] %s18_s21 }
   0x4   :  { %s2420_s22 = scalar_lea.vmem %s31_s19, 2048  ;;  %p2425_p1 = scmp.lt.s32.totalorder %s31_s19, %s31_s19 }
   0x5   :  { %p2421_p0 = scmp.ne.s32.totalorder %s31_s19, %s2420_s22  ;;  %p2426_p2 = scmp.lt.s32.totalorder %s2420_s22, %s2420_s22 }
   0x7   :  { %p2427_p3 = por %p2426_p2, %p2425_p1 }
   0x9   :  { %p2428_p4 = pnand %p2427_p3, %p2421_p0 }
   0xb   :  { %2431 = shalt.err (!%p2428_p4)
}
   0xc   :  { %s2500_s23 = smov 128   ;;  %s2501_s24 = smov 8  }
   0xd   :  { %36 = dma.hbm_to_vmem [thread:$0]  %s2768_s1, 2048, %s31_s19, [#allocation6], %s2500_s23, %s2500_s23, %s2501_s24  }
   0xe   :  { %s2440_s27 = scalar_lea.vmem %s19_s21, 256  ;;  %p2445_p6 = scmp.lt.s32.totalorder %s19_s21, %s19_s21 }
   0xf   :  { %p2441_p5 = scmp.ne.s32.totalorder %s19_s21, %s2440_s27  ;;  %p2446_p7 = scmp.lt.s32.totalorder %s2440_s27, %s2440_s27 }
  0x11   :  { %p2447_p8 = por %p2446_p7, %p2445_p6 }
  0x13   :  { %p2448_p9 = pnand %p2447_p8, %p2441_p5 }
  0x15   :  { %2451 = shalt.err (!%p2448_p9)
}
  0x16   :  { %24 = dma.hbm_to_vmem [thread:$0]  %s2767_s0, 256, %s19_s21, [#allocation3], %s2500_s23, %s2500_s23, %s2501_s24  }
  0x17   :  { %s2502_s30 = smov [#allocation7]  }
  0x18   :  { %s44_s6 = sshll.u32 %s2502_s30, 4  ;;  %s45_s6 = int_to_ptr.vmem [resolvable:$true] %s44_s6 }
  0x19   :  { %s2460_s7 = scalar_lea.vmem %s45_s6, 512  ;;  %p2465_p11 = scmp.lt.s32.totalorder %s45_s6, %s45_s6 }
  0x1a   :  { %p2461_p10 = scmp.ne.s32.totalorder %s45_s6, %s2460_s7  ;;  %p2466_p12 = scmp.lt.s32.totalorder %s2460_s7, %s2460_s7 }
  0x1c   :  { %p2467_p13 = por %p2466_p12, %p2465_p11 }
  0x1e   :  { %p2468_p0 = pnand %p2467_p13, %p2461_p10 }
  0x20   :  { %2471 = shalt.err (!%p2468_p0)
}
  0x21   :  { %50 = dma.hbm_to_vmem [thread:$0]  %s2770_s3, 512, %s45_s6, [#allocation6], %s2500_s23, %s2500_s23, %s2501_s24  }
  0x22   :  { %2492 = dma.done.wait [#allocation3], 256  }
  0x23   :  { %2493 = vsyncadd [#allocation3], 4294967040 }
  0x24   :  { %2494 = dma.done.wait [#allocation6], 2560  }
  0x25   :  { %2495 = vsyncadd [#allocation6], 4294964736  ;;  %v79_v0 = vld [vmem:[#allocation5 + $0x78] sm:$0xff]  ;;  %v78_v1 = vld [vmem:[#allocation5 + $0x70] sm:$0xff]  ;;  %v2503_v18 = vmov 0.0   ;;  %vm2504_vm0 = vmmov 0  }
  0x26   :  { %2206 = vmatprep.subr.mxu0 %v79_v0  ;;  %v77_v2 = vld [vmem:[#allocation5 + $0x68] sm:$0xff]  ;;  %v76_v3 = vld [vmem:[#allocation5 + $0x60] sm:$0xff]  ;;  %v62_v4 = vld [vmem:[#allocation2] sm:$0xff]  ;;  %2241 = vmatprep.subr.mxu1 %v2503_v18  ;;  %s2505_s9 = smov 64   ;;  %s2506_s10 = smov 96   ;;  %vm166_vm1 = vcmask 64512  }
  0x27   :  { %2207 = vmatpush3.msra.mxu0 %v79_v0  ;;  %v75_v5 = vld [vmem:[#allocation5 + $0x58] sm:$0xff]  ;;  %2238 = vmatprep.mubr.f32.mxu0 %v62_v4  ;;  %v74_v6 = vld [vmem:[#allocation5 + $0x50] sm:$0xff]  ;;  %v73_v7 = vld [vmem:[#allocation5 + $0x48] sm:$0xff]  ;;  %s2507_s11 = smov 88   ;;  %s2509_s12 = smov 56  }
  0x28   :  { %2208 = vmatprep.subr.mxu0 %v78_v1  ;;  %v72_v8 = vld [vmem:[#allocation5 + $0x40] sm:$0xff]  ;;  %v71_v9 = vld [vmem:[#allocation5 + $0x38] sm:$0xff]  ;;  %v70_v10 = vld [vmem:[#allocation5 + $0x30] sm:$0xff]  ;;  %2243 = vmatprep.mubr.msk.f32.mxu1 %vm2504_vm0, %v2503_v18  ;;  %s2510_s13 = smov 80   ;;  %s2511_s14 = smov 112  }
  0x29   :  { %2209 = vmatpush3.msra.mxu0 %v78_v1  ;;  %v69_v11 = vld [vmem:[#allocation5 + $0x28] sm:$0xff]  ;;  %v68_v12 = vld [vmem:[#allocation5 + $0x20] sm:$0xff]  ;;  %v67_v13 = vld [vmem:[#allocation5 + $0x18] sm:$0xff]  ;;  %s2512_s15 = smov 48   ;;  %s2513_s16 = smov 72  }
  0x2a   :  { %2210 = vmatprep.subr.mxu0 %v77_v2  ;;  %v66_v14 = vld [vmem:[#allocation5 + $0x10] sm:$0xff]  ;;  %v65_v15 = vld [vmem:[#allocation5 + $0x8] sm:$0xff]  ;;  %v64_v16 = vld [vmem:[#allocation5] sm:$0xff]  ;;  %s2514_s17 = smov 104   ;;  %s2515_s18 = smov 40  }
  0x2b   :  { %2211 = vmatpush3.msra.mxu0 %v77_v2  ;;  %v63_v17 = vld [vmem:[#allocation2 + $0x8] sm:$0xff]  ;;  %v2106_v19 = vld [vmem:[%s2769_s2] ss:$0 sm:$0xff]  ;;  %s2508_s2 = smov 120   ;;  %v2612_v53 = vld [vmem:[#allocation7 + $0x8] sm:$0xff] }
  0x2c   :  { %2212 = vmatprep.subr.mxu0 %v76_v3  ;;  %v2619_v54 = vld [vmem:[#allocation7] sm:$0xff] }
  0x2d   :  { %2213 = vmatpush3.msra.mxu0 %v76_v3 }
  0x2e   :  { %2214 = vmatprep.subr.mxu0 %v75_v5 }
  0x2f   :  { %2215 = vmatpush3.msra.mxu0 %v75_v5 }
  0x30   :  { %2216 = vmatprep.subr.mxu0 %v74_v6 }
  0x31   :  { %2217 = vmatpush3.msra.mxu0 %v74_v6 }
  0x32   :  { %2218 = vmatprep.subr.mxu0 %v73_v7 }
  0x33   :  { %2219 = vmatpush3.msra.mxu0 %v73_v7 }
  0x34   :  { %2220 = vmatprep.subr.mxu0 %v72_v8 }
  0x35   :  { %2221 = vmatpush3.msra.mxu0 %v72_v8 }
  0x36   :  { %2222 = vmatprep.subr.mxu0 %v71_v9 }
  0x37   :  { %2223 = vmatpush3.msra.mxu0 %v71_v9  ;;  %v2645_v9 = vld [vmem:[#allocation7 + $0x10] sm:$0xff] }
  0x38   :  { %2224 = vmatprep.subr.mxu0 %v70_v10 }
  0x39   :  { %2225 = vmatpush3.msra.mxu0 %v70_v10 }
  0x3a   :  { %2226 = vmatprep.subr.mxu0 %v69_v11 }
  0x3b   :  { %2227 = vmatpush3.msra.mxu0 %v69_v11 }
  0x3c   :  { %2228 = vmatprep.subr.mxu0 %v68_v12 }
  0x3d   :  { %2229 = vmatpush3.msra.mxu0 %v68_v12 }
  0x3e   :  { %2230 = vmatprep.subr.mxu0 %v67_v13 }
  0x3f   :  { %2231 = vmatpush3.msra.mxu0 %v67_v13 }
  0x40   :  { %2232 = vmatprep.subr.mxu0 %v66_v14 }
  0x41   :  { %2233 = vmatpush3.msra.mxu0 %v66_v14 }
  0x42   :  { %2234 = vmatprep.subr.mxu0 %v65_v15 }
  0x43   :  { %2235 = vmatpush3.msra.mxu0 %v65_v15 }
  0x44   :  { %2236 = vmatprep.subr.mxu0 %v64_v16 }
  0x45   :  { %2237 = vmatpush3.msra.mxu0 %v64_v16 }
  0x46   :  { %2239 = vmatmul.mubr.f32.vlgmr.msra.gmra.mxu0 %v63_v17  ;;  %2281 = vmatprep.subr.mxu0 %v2503_v18 }
  0x47   :  { %2283 = vmatprep.mubr.msk.f32.mxu0 %vm2504_vm0, %v2503_v18  ;;  %2282 = vmatpush3.msra.mxu0 %v2645_v9 }
  0x48   :  { %2291 = vmatprep.subr.mxu0 %v2503_v18 }
 0x106   :  { %v2240_v20 = vpop.f32.mrf.mxu0 }
 0x107   :  { %v2574_v21 = vadd.f32 %v2240_v20, %v2106_v19 }
 0x108   :  { %v153_v22 = vpop.f32.mrf.mxu0 }
 0x109   :  { %v2576_v23 = vadd.f32 %v2106_v19, %v153_v22 }
 0x10b   :  { %252 = vrot.lane.b32.xlu1 %v2576_v23, %s2505_s9  ;;  %164 = vrot.lane.b32.xlu0 %v2576_v23, %s2506_s10 }
 0x10f   :  { %331 = vrot.lane.b32.xlu1 %v2576_v23, %s2507_s11 }
 0x17d   :  { %v165_v24 = vpop.permute.xlu0 %164  ;;  %v253_v25 = vpop.permute.xlu1 %252 }
 0x17e   :  { %2242 = vmatpush3.xpose.msk.msra.mxu1 %vm166_vm1, %v165_v24 }
 0x17f   :  { %2246 = vmatprep.subr.mxu1 %v2503_v18 }
 0x181   :  { %2244 = vmatmul.mubr.msk.f32.vlgmr.msra.gmra.mxu1 %vm166_vm1, %v2576_v23  ;;  %v332_v34 = vpop.permute.xlu1 %331 }
 0x182   :  { %2247 = vmatpush3.msra.mxu1 %v253_v25  ;;  %2248 = vmatprep.mubr.msk.f32.mxu1 %vm2504_vm0, %v2503_v18 }
 0x183   :  { %2251 = vmatprep.subr.mxu1 %v2503_v18 }
 0x241   :  { %v237_v26 = vpop.f32.mrf.mxu1 }
 0x242   :  { %v241_v27 = vsel %vm166_vm1, %v237_v26, -inf }
 0x243   :  { %242 = vmax.xlane.f32.xlu0 %v241_v27  ;;  %v2245_v28 = vpop.f32.mrf.mxu1 }
 0x2cc   :  { %v243_v29 = vpop.xlane.xlu0 %242 }
 0x2cd   :  { %v244_v30 = vsub.f32 %v237_v26, %v243_v29 }
 0x2cf   :  { %v245_v31 = vmul.f32 1.442695, %v244_v30 }
 0x2d1   :  { %2380 = vpow2.f32 %v245_v31 }
 0x2de   :  { %v2381_v32 = vpop.eup %2380 }
 0x2df   :  { %v247_v33 = vsel %vm166_vm1, %v2381_v32, 0.0 }
 0x2e0   :  { %248 = vadd.xlane.f32.xlu1 %v247_v33 }
 0x2f1   :  { %329 = vrot.lane.b32.xlu1 %v2576_v23, %s2508_s2 }
 0x369   :  { %v249_v35 = vpop.xlane.xlu1 %248 }
 0x36a   :  { %2382 = vrcp.f32 %v249_v35 }
 0x36d   :  { %v330_v38 = vpop.permute.xlu1 %329 }
 0x377   :  { %v2383_v36 = vpop.eup %2382 }
 0x378   :  { %v251_v37 = vmul.f32 %v2383_v36, %v2381_v32 }
 0x37a   :  { %2249 = vmatmul.mubr.msk.f32.vlgmr.msra.gmra.mxu1 %vm166_vm1, %v251_v37  ;;  %v2685_v37 = vld [vmem:[#allocation7 + $0x18] sm:$0xff] }
 0x37b   :  { %2252 = vmatpush3.xpose.msk.msra.mxu1 %vm166_vm1, %v332_v34  ;;  %2253 = vmatprep.mubr.msk.f32.mxu1 %vm2504_vm0, %v2503_v18 }
 0x37c   :  { %2256 = vmatprep.subr.mxu1 %v2503_v18 }
 0x37e   :  { %2254 = vmatmul.mubr.msk.f32.vlgmr.msra.gmra.mxu1 %vm166_vm1, %v330_v38 }
 0x37f   :  { %2258 = vmatprep.mubr.msk.f32.mxu1 %vm2504_vm0, %v2503_v18 }
 0x43a   :  { %v324_v39 = vpop.f32.mrf.mxu1 }
 0x43c   :  { %v2250_v40 = vpop.f32.mrf.mxu1 }
 0x43e   :  { %v403_v41 = vpop.f32.mrf.mxu1 }
 0x43f   :  { %v407_v42 = vsel %vm166_vm1, %v403_v41, -inf }
 0x440   :  { %408 = vmax.xlane.f32.xlu1 %v407_v42  ;;  %v2255_v43 = vpop.f32.mrf.mxu1 }
 0x4c9   :  { %v409_v44 = vpop.xlane.xlu1 %408 }
 0x4ca   :  { %v410_v45 = vsub.f32 %v403_v41, %v409_v44 }
 0x4cc   :  { %v411_v46 = vmul.f32 1.442695, %v410_v45 }
 0x4ce   :  { %2384 = vpow2.f32 %v411_v46 }
 0x4db   :  { %v2385_v47 = vpop.eup %2384 }
 0x4dc   :  { %v413_v48 = vsel %vm166_vm1, %v2385_v47, 0.0 }
 0x4dd   :  { %414 = vadd.xlane.f32.xlu0 %v413_v48 }
 0x4f3   :  { %418 = vrot.lane.b32.xlu0 %v2576_v23, %s2509_s12 }
 0x4f7   :  { %643 = vrot.lane.b32.xlu0 %v2576_v23, %s2510_s13 }
 0x4fb   :  { %641 = vrot.lane.b32.xlu0 %v2576_v23, %s2511_s14 }
 0x566   :  { %v415_v49 = vpop.xlane.xlu0 %414 }
 0x567   :  { %2386 = vrcp.f32 %v415_v49 }
 0x56a   :  { %v419_v50 = vpop.permute.xlu0 %418 }
 0x56b   :  { %2257 = vmatpush3.msra.mxu1 %v419_v50 }
 0x56c   :  { %2261 = vmatprep.subr.mxu1 %v2503_v18 }
 0x56e   :  { %v644_v56 = vpop.permute.xlu0 %643 }
 0x572   :  { %v642_v58 = vpop.permute.xlu0 %641 }
 0x574   :  { %v2387_v51 = vpop.eup %2386 }
 0x575   :  { %v417_v52 = vmul.f32 %v2387_v51, %v2385_v47 }
 0x577   :  { %2259 = vmatmul.mubr.msk.f32.vlgmr.msra.gmra.mxu1 %vm166_vm1, %v417_v52 }
 0x578   :  { %2262 = vmatpush3.msra.mxu1 %v2612_v53  ;;  %2263 = vmatprep.mubr.msk.f32.mxu1 %vm2504_vm0, %v2503_v18 }
 0x579   :  { %2266 = vmatprep.subr.mxu1 %v2503_v18 }
 0x637   :  { %v490_v55 = vpop.f32.mrf.mxu1 }
 0x638   :  { %2264 = vmatmul.mubr.msk.f32.vlgmr.msra.gmra.mxu1 %vm166_vm1, %v490_v55 }
 0x639   :  { %2267 = vmatpush3.msra.mxu1 %v2619_v54  ;;  %v2260_v57 = vpop.f32.mrf.mxu1  ;;  %2268 = vmatprep.mubr.msk.f32.mxu1 %vm2504_vm0, %v2503_v18 }
 0x63a   :  { %2271 = vmatprep.subr.mxu1 %v2503_v18  ;;  %v2705_v57 = vld [vmem:[%s2771_s4] ss:$0 sm:$0xff]  ;;  %s2516_s4 = smov [#allocation8]  }
 0x63b   :  { %s2093_s21 = sshll.u32 %s2516_s4, 4  ;;  %s2094_s21 = int_to_ptr.vmem [resolvable:$true] %s2093_s21 }
 0x63c   :  { %2269 = vmatmul.mubr.msk.f32.vlgmr.msra.gmra.mxu1 %vm166_vm1, %v324_v39  ;;  %s2472_s22 = scalar_lea.vmem %s2094_s21, 256  ;;  %p2477_p2 = scmp.lt.s32.totalorder %s2094_s21, %s2094_s21 }
 0x63d   :  { %2272 = vmatpush3.xpose.msk.msra.mxu1 %vm166_vm1, %v644_v56  ;;  %2273 = vmatprep.mubr.msk.f32.mxu1 %vm2504_vm0, %v2503_v18  ;;  %p2473_p1 = scmp.ne.s32.totalorder %s2094_s21, %s2472_s22  ;;  %p2478_p3 = scmp.lt.s32.totalorder %s2472_s22, %s2472_s22 }
 0x63e   :  { %2276 = vmatprep.subr.mxu1 %v2503_v18 }
 0x63f   :  { %p2479_p4 = por %p2478_p3, %p2477_p2 }
 0x640   :  { %2274 = vmatmul.mubr.msk.f32.vlgmr.msra.gmra.mxu1 %vm166_vm1, %v642_v58 }
 0x641   :  { %2278 = vmatprep.mubr.msk.f32.mxu1 %vm2504_vm0, %v2503_v18  ;;  %p2480_p5 = pnand %p2479_p4, %p2473_p1 }
 0x6f8   :  { %v564_v59 = vpop.f32.mrf.mxu1 }
 0x6fa   :  { %v2265_v60 = vpop.f32.mrf.mxu1 }
 0x6fc   :  { %v637_v61 = vpop.f32.mrf.mxu1 }
 0x6fd   :  { %v638_v62 = vadd.f32 %v637_v61, %v564_v59 }
 0x6fe   :  { %v2270_v63 = vpop.f32.mrf.mxu1 }
 0x700   :  { %v715_v0 = vpop.f32.mrf.mxu1 }
 0x701   :  { %v719_v1 = vsel %vm166_vm1, %v715_v0, -inf }
 0x702   :  { %720 = vmax.xlane.f32.xlu1 %v719_v1  ;;  %v2275_v2 = vpop.f32.mrf.mxu1 }
 0x713   :  { %730 = vrot.lane.b32.xlu1 %v2576_v23, %s2512_s15 }
 0x717   :  { %883 = vrot.lane.b32.xlu1 %v2576_v23, %s2513_s16 }
 0x71b   :  { %881 = vrot.lane.b32.xlu1 %v2576_v23, %s2514_s17 }
 0x78b   :  { %v721_v3 = vpop.xlane.xlu1 %720 }
 0x78c   :  { %v722_v4 = vsub.f32 %v715_v0, %v721_v3 }
 0x78e   :  { %v723_v5 = vmul.f32 1.442695, %v722_v4 }
 0x78f   :  { %v731_v6 = vpop.permute.xlu1 %730 }
 0x790   :  { %2388 = vpow2.f32 %v723_v5  ;;  %2277 = vmatpush3.msra.mxu1 %v731_v6 }
 0x791   :  { %2286 = vmatprep.subr.mxu1 %v2503_v18 }
 0x793   :  { %v884_v12 = vpop.permute.xlu1 %883 }
 0x797   :  { %v882_v14 = vpop.permute.xlu1 %881 }
 0x79d   :  { %v2389_v7 = vpop.eup %2388 }
 0x79e   :  { %v725_v8 = vsel %vm166_vm1, %v2389_v7, 0.0 }
 0x79f   :  { %726 = vadd.xlane.f32.xlu0 %v725_v8 }
 0x7b5   :  { %970 = vrot.lane.b32.xlu0 %v2576_v23, %s2515_s18 }
 0x828   :  { %v727_v10 = vpop.xlane.xlu0 %726 }
 0x829   :  { %2390 = vrcp.f32 %v727_v10 }
 0x82c   :  { %v971_v16 = vpop.permute.xlu0 %970 }
 0x836   :  { %v2391_v11 = vpop.eup %2390 }
 0x837   :  { %v729_v13 = vmul.f32 %v2391_v11, %v2389_v7 }
 0x839   :  { %2279 = vmatmul.mubr.msk.f32.vlgmr.msra.gmra.mxu1 %vm166_vm1, %v729_v13 }
 0x83a   :  { %2287 = vmatpush3.xpose.msk.msra.mxu1 %vm166_vm1, %v884_v12  ;;  %2288 = vmatprep.mubr.msk.f32.mxu1 %vm2504_vm0, %v2503_v18 }
 0x83b   :  { %2296 = vmatprep.subr.mxu1 %v2503_v18 }
 0x83d   :  { %2289 = vmatmul.mubr.msk.f32.vlgmr.msra.gmra.mxu1 %vm166_vm1, %v882_v14 }
 0x83e   :  { %2298 = vmatprep.mubr.msk.f32.mxu1 %vm2504_vm0, %v2503_v18  ;;  %2297 = vmatpush3.msra.mxu1 %v2685_v37 }
 0x83f   :  { %2306 = vmatprep.subr.mxu1 %v2503_v18 }
 0x8f9   :  { %v802_v15 = vpop.f32.mrf.mxu1 }
 0x8fa   :  { %2284 = vmatmul.mubr.msk.f32.vlgmr.msra.gmra.mxu0 %vm166_vm1, %v802_v15 }
 0x8fb   :  { %2292 = vmatpush3.msra.mxu0 %v971_v16  ;;  %v2280_v17 = vpop.f32.mrf.mxu1  ;;  %2293 = vmatprep.mubr.msk.f32.mxu0 %vm2504_vm0, %v2503_v18 }
 0x8fc   :  { %2301 = vmatprep.subr.mxu0 %v2503_v18 }
 0x8fd   :  { %v955_v19 = vpop.f32.mrf.mxu1 }
 0x8fe   :  { %v959_v20 = vsel %vm166_vm1, %v955_v19, -inf }
 0x8ff   :  { %960 = vmax.xlane.f32.xlu1 %v959_v20  ;;  %v2290_v22 = vpop.f32.mrf.mxu1 }
 0x910   :  { %1294 = vrot.lane.b32.xlu1 %v2574_v21, %s2508_s2 }
 0x988   :  { %v961_v23 = vpop.xlane.xlu1 %960 }
 0x989   :  { %v962_v24 = vsub.f32 %v955_v19, %v961_v23 }
 0x98b   :  { %v963_v25 = vmul.f32 1.442695, %v962_v24 }
 0x98c   :  { %v1295_v36 = vpop.permute.xlu1 %1294 }
 0x98d   :  { %2392 = vpow2.f32 %v963_v25 }
 0x99a   :  { %v2393_v26 = vpop.eup %2392 }
 0x99b   :  { %v965_v27 = vsel %vm166_vm1, %v2393_v26, 0.0 }
 0x99c   :  { %966 = vadd.xlane.f32.xlu0 %v965_v27 }
 0x9b2   :  { %1130 = vrot.lane.b32.xlu0 %v2574_v21, %s2506_s10 }
 0x9b6   :  { %1296 = vrot.lane.b32.xlu0 %v2574_v21, %s2507_s11 }
 0x9ba   :  { %v876_v28 = vpop.f32.mrf.mxu0 }
 0x9bb   :  { %v880_v29 = vadd.f32 %v876_v28, %v638_v62 }
 0x9bc   :  { %v2285_v30 = vpop.f32.mrf.mxu0 }
 0xa25   :  { %v967_v31 = vpop.xlane.xlu0 %966 }
 0xa26   :  { %2394 = vrcp.f32 %v967_v31 }
 0xa29   :  { %v1131_v33 = vpop.permute.xlu0 %1130 }
 0xa2d   :  { %v1297_v35 = vpop.permute.xlu0 %1296 }
 0xa33   :  { %v2395_v32 = vpop.eup %2394 }
 0xa34   :  { %v969_v34 = vmul.f32 %v2395_v32, %v2393_v26 }
 0xa36   :  { %2294 = vmatmul.mubr.msk.f32.vlgmr.msra.gmra.mxu0 %vm166_vm1, %v969_v34 }
 0xa37   :  { %2302 = vmatpush3.xpose.msk.msra.mxu0 %vm166_vm1, %v1131_v33  ;;  %2303 = vmatprep.mubr.msk.f32.mxu0 %vm2504_vm0, %v2503_v18 }
 0xa38   :  { %2311 = vmatprep.subr.mxu0 %v2503_v18 }
 0xa3a   :  { %2304 = vmatmul.mubr.msk.f32.vlgmr.msra.gmra.mxu0 %vm166_vm1, %v2574_v21 }
 0xa3b   :  { %2312 = vmatpush3.xpose.msk.msra.mxu0 %vm166_vm1, %v1297_v35  ;;  %2313 = vmatprep.mubr.msk.f32.mxu0 %vm2504_vm0, %v2503_v18 }
 0xa3c   :  { %2321 = vmatprep.subr.mxu0 %v2503_v18 }
 0xa3e   :  { %2314 = vmatmul.mubr.msk.f32.vlgmr.msra.gmra.mxu0 %vm166_vm1, %v1295_v36 }
 0xa3f   :  { %2322 = vmatpush3.msra.mxu0 %v2612_v53  ;;  %2323 = vmatprep.mubr.msk.f32.mxu0 %vm2504_vm0, %v2503_v18 }
 0xa40   :  { %2331 = vmatprep.subr.mxu0 %v2503_v18 }
 0xaf6   :  { %v1042_v38 = vpop.f32.mrf.mxu0 }
 0xaf7   :  { %2299 = vmatmul.mubr.msk.f32.vlgmr.msra.gmra.mxu1 %vm166_vm1, %v1042_v38 }
 0xaf8   :  { %v2295_v39 = vpop.f32.mrf.mxu0  ;;  %2308 = vmatprep.mubr.msk.f32.mxu1 %vm2504_vm0, %v2503_v18 }
 0xafa   :  { %v1202_v40 = vpop.f32.mrf.mxu0 }
 0xafb   :  { %v1206_v41 = vsel %vm166_vm1, %v1202_v40, -inf }
 0xafc   :  { %1207 = vmax.xlane.f32.xlu0 %v1206_v41  ;;  %v2305_v42 = vpop.f32.mrf.mxu0 }
 0xafe   :  { %v1368_v43 = vpop.f32.mrf.mxu0 }
 0xaff   :  { %v1372_v44 = vsel %vm166_vm1, %v1368_v43, -inf }
 0xb00   :  { %1373 = vmax.xlane.f32.xlu1 %v1372_v44  ;;  %v2315_v45 = vpop.f32.mrf.mxu0 }
 0xb11   :  { %1383 = vrot.lane.b32.xlu1 %v2574_v21, %s2509_s12 }
 0xb85   :  { %v1208_v46 = vpop.xlane.xlu0 %1207 }
 0xb86   :  { %v1209_v47 = vsub.f32 %v1202_v40, %v1208_v46 }
 0xb88   :  { %v1210_v48 = vmul.f32 1.442695, %v1209_v47 }
 0xb89   :  { %v1374_v49 = vpop.xlane.xlu1 %1373 }
 0xb8a   :  { %2396 = vpow2.f32 %v1210_v48  ;;  %v1375_v50 = vsub.f32 %v1368_v43, %v1374_v49 }
 0xb8c   :  { %v1376_v51 = vmul.f32 1.442695, %v1375_v50 }
 0xb8d   :  { %v1384_v3 = vpop.permute.xlu1 %1383 }
 0xb8e   :  { %2398 = vpow2.f32 %v1376_v51 }
 0xb97   :  { %v2397_v52 = vpop.eup %2396 }
 0xb98   :  { %v1212_v53 = vsel %vm166_vm1, %v2397_v52, 0.0 }
 0xb99   :  { %1213 = vadd.xlane.f32.xlu0 %v1212_v53 }
 0xb9b   :  { %v2399_v55 = vpop.eup %2398 }
 0xb9c   :  { %v1378_v56 = vsel %vm166_vm1, %v2399_v55, 0.0 }
 0xb9d   :  { %1379 = vadd.xlane.f32.xlu0 %v1378_v56 }
 0xbb3   :  { %1217 = vrot.lane.b32.xlu0 %v2574_v21, %s2505_s9 }
 0xbb7   :  { %1608 = vrot.lane.b32.xlu0 %v2574_v21, %s2510_s13  ;;  %v1116_v58 = vpop.f32.mrf.mxu1 }
 0xbb8   :  { %v1120_v59 = vadd.f32 %v1116_v58, %v880_v29 }
 0xbb9   :  { %v2300_v60 = vpop.f32.mrf.mxu1 }
 0xbba   :  { %v1127_v61 = vadd.f32 %v2705_v57, %v1120_v59 }
 0xbbb   :  { %1606 = vrot.lane.b32.xlu0 %v2574_v21, %s2511_s14 }
 0xbbc   :  { %1128 = vst [vmem:[#allocation8] sm:$0xff] %v1127_v61 }
 0xc22   :  { %v1214_v62 = vpop.xlane.xlu0 %1213 }
 0xc23   :  { %2400 = vrcp.f32 %v1214_v62 }
 0xc26   :  { %v1380_v63 = vpop.xlane.xlu0 %1379 }
 0xc27   :  { %2402 = vrcp.f32 %v1380_v63 }
 0xc2a   :  { %v1218_v0 = vpop.permute.xlu0 %1217 }
 0xc2b   :  { %2307 = vmatpush3.msra.mxu1 %v1218_v0 }
 0xc2c   :  { %2316 = vmatprep.subr.mxu1 %v2503_v18 }
 0xc2e   :  { %v1609_v7 = vpop.permute.xlu0 %1608 }
 0xc30   :  { %v2401_v1 = vpop.eup %2400 }
 0xc31   :  { %v1216_v2 = vmul.f32 %v2401_v1, %v2397_v52 }
 0xc33   :  { %2309 = vmatmul.mubr.msk.f32.vlgmr.msra.gmra.mxu1 %vm166_vm1, %v1216_v2 }
 0xc34   :  { %v2403_v4 = vpop.eup %2402  ;;  %2317 = vmatpush3.msra.mxu1 %v1384_v3  ;;  %2318 = vmatprep.mubr.msk.f32.mxu1 %vm2504_vm0, %v2503_v18 }
 0xc35   :  { %v1382_v5 = vmul.f32 %v2403_v4, %v2399_v55  ;;  %2326 = vmatprep.subr.mxu1 %v2503_v18 }
 0xc37   :  { %2319 = vmatmul.mubr.msk.f32.vlgmr.msra.gmra.mxu1 %vm166_vm1, %v1382_v5 }
 0xc38   :  { %2327 = vmatpush3.msra.mxu1 %v2619_v54  ;;  %2328 = vmatprep.mubr.msk.f32.mxu1 %vm2504_vm0, %v2503_v18  ;;  %v1607_v54 = vpop.permute.xlu0 %1606 }
 0xc39   :  { %2336 = vmatprep.subr.mxu1 %v2503_v18 }
 0xcf3   :  { %v1289_v6 = vpop.f32.mrf.mxu1 }
 0xcf4   :  { %2329 = vmatmul.mubr.msk.f32.vlgmr.msra.gmra.mxu1 %vm166_vm1, %v1289_v6 }
 0xcf5   :  { %v2310_v8 = vpop.f32.mrf.mxu1  ;;  %2338 = vmatprep.mubr.msk.f32.mxu1 %vm2504_vm0, %v2503_v18 }
 0xcf7   :  { %v1455_v10 = vpop.f32.mrf.mxu1 }
 0xcf8   :  { %2324 = vmatmul.mubr.msk.f32.vlgmr.msra.gmra.mxu0 %vm166_vm1, %v1455_v10 }
 0xcf9   :  { %2332 = vmatpush3.xpose.msk.msra.mxu0 %vm166_vm1, %v1609_v7  ;;  %v2320_v11 = vpop.f32.mrf.mxu1  ;;  %2333 = vmatprep.mubr.msk.f32.mxu0 %vm2504_vm0, %v2503_v18 }
 0xcfa   :  { %2341 = vmatprep.subr.mxu0 %v2503_v18 }
 0xcfc   :  { %2334 = vmatmul.mubr.msk.f32.vlgmr.msra.gmra.mxu0 %vm166_vm1, %v1607_v54 }
 0xcfd   :  { %2342 = vmatpush3.msra.mxu0 %v2645_v9  ;;  %2343 = vmatprep.mubr.msk.f32.mxu0 %vm2504_vm0, %v2503_v18 }
 0xcfe   :  { %2351 = vmatprep.subr.mxu0 %v2503_v18 }
 0xdb4   :  { %v1602_v12 = vpop.f32.mrf.mxu1 }
 0xdb6   :  { %v2330_v13 = vpop.f32.mrf.mxu1 }
 0xdb8   :  { %v1529_v14 = vpop.f32.mrf.mxu0 }
 0xdb9   :  { %v1603_v15 = vadd.f32 %v1602_v12, %v1529_v14 }
 0xdba   :  { %v2325_v16 = vpop.f32.mrf.mxu0 }
 0xdbc   :  { %v1680_v17 = vpop.f32.mrf.mxu0 }
 0xdbd   :  { %v1684_v19 = vsel %vm166_vm1, %v1680_v17, -inf }
 0xdbe   :  { %1685 = vmax.xlane.f32.xlu1 %v1684_v19  ;;  %v2335_v20 = vpop.f32.mrf.mxu0 }
 0xdcf   :  { %1848 = vrot.lane.b32.xlu1 %v2574_v21, %s2513_s16 }
 0xdd3   :  { %1846 = vrot.lane.b32.xlu1 %v2574_v21, %s2514_s17 }
 0xe47   :  { %v1686_v9 = vpop.xlane.xlu1 %1685 }
 0xe48   :  { %v1687_v22 = vsub.f32 %v1680_v17, %v1686_v9 }
 0xe4a   :  { %v1688_v23 = vmul.f32 1.442695, %v1687_v22 }
 0xe4b   :  { %v1849_v29 = vpop.permute.xlu1 %1848 }
 0xe4c   :  { %2404 = vpow2.f32 %v1688_v23 }
 0xe4f   :  { %v1847_v31 = vpop.permute.xlu1 %1846 }
 0xe59   :  { %v2405_v24 = vpop.eup %2404 }
 0xe5a   :  { %v1690_v25 = vsel %vm166_vm1, %v2405_v24, 0.0 }
 0xe5b   :  { %1691 = vadd.xlane.f32.xlu0 %v1690_v25 }
 0xe71   :  { %1695 = vrot.lane.b32.xlu0 %v2574_v21, %s2512_s15 }
 0xee4   :  { %v1692_v26 = vpop.xlane.xlu0 %1691 }
 0xee5   :  { %2406 = vrcp.f32 %v1692_v26 }
 0xee8   :  { %v1696_v27 = vpop.permute.xlu0 %1695 }
 0xee9   :  { %2337 = vmatpush3.msra.mxu1 %v1696_v27 }
 0xeea   :  { %2346 = vmatprep.subr.mxu1 %v2503_v18 }
 0xef2   :  { %v2407_v28 = vpop.eup %2406 }
 0xef3   :  { %v1694_v30 = vmul.f32 %v2407_v28, %v2405_v24 }
 0xef5   :  { %2339 = vmatmul.mubr.msk.f32.vlgmr.msra.gmra.mxu1 %vm166_vm1, %v1694_v30 }
 0xef6   :  { %2347 = vmatpush3.xpose.msk.msra.mxu1 %vm166_vm1, %v1849_v29  ;;  %2348 = vmatprep.mubr.msk.f32.mxu1 %vm2504_vm0, %v2503_v18 }
 0xef7   :  { %2356 = vmatprep.subr.mxu1 %v2503_v18 }
 0xef9   :  { %2349 = vmatmul.mubr.msk.f32.vlgmr.msra.gmra.mxu1 %vm166_vm1, %v1847_v31 }
 0xefa   :  { %2357 = vmatpush3.msra.mxu1 %v2685_v37  ;;  %2358 = vmatprep.mubr.msk.f32.mxu1 %vm2504_vm0, %v2503_v18 }
 0xfb5   :  { %v1767_v32 = vpop.f32.mrf.mxu1 }
 0xfb6   :  { %2344 = vmatmul.mubr.msk.f32.vlgmr.msra.gmra.mxu0 %vm166_vm1, %v1767_v32 }
 0xfb7   :  { %v2340_v33 = vpop.f32.mrf.mxu1  ;;  %2353 = vmatprep.mubr.msk.f32.mxu0 %vm2504_vm0, %v2503_v18 }
 0xfb9   :  { %v1920_v34 = vpop.f32.mrf.mxu1 }
 0xfba   :  { %v1924_v35 = vsel %vm166_vm1, %v1920_v34, -inf }
 0xfbb   :  { %1925 = vmax.xlane.f32.xlu0 %v1924_v35  ;;  %v2350_v36 = vpop.f32.mrf.mxu1 }
 0xfd1   :  { %1935 = vrot.lane.b32.xlu0 %v2574_v21, %s2515_s18 }
0x1044   :  { %v1926_v38 = vpop.xlane.xlu0 %1925 }
0x1045   :  { %v1927_v37 = vsub.f32 %v1920_v34, %v1926_v38 }
0x1047   :  { %v1928_v39 = vmul.f32 1.442695, %v1927_v37 }
0x1048   :  { %v1936_v40 = vpop.permute.xlu0 %1935 }
0x1049   :  { %2408 = vpow2.f32 %v1928_v39  ;;  %2352 = vmatpush3.msra.mxu0 %v1936_v40 }
0x1056   :  { %v2409_v41 = vpop.eup %2408 }
0x1057   :  { %v1930_v42 = vsel %vm166_vm1, %v2409_v41, 0.0 }
0x1058   :  { %1931 = vadd.xlane.f32.xlu1 %v1930_v42 }
0x1076   :  { %v1841_v43 = vpop.f32.mrf.mxu0 }
0x1077   :  { %v1845_v18 = vadd.f32 %v1841_v43, %v1603_v15 }
0x1078   :  { %v2345_v44 = vpop.f32.mrf.mxu0 }
0x10e1   :  { %v1932_v45 = vpop.xlane.xlu1 %1931 }
0x10e2   :  { %2410 = vrcp.f32 %v1932_v45 }
0x10ef   :  { %v2411_v46 = vpop.eup %2410 }
0x10f0   :  { %v1934_v47 = vmul.f32 %v2411_v46, %v2409_v41 }
0x10f2   :  { %2354 = vmatmul.mubr.msk.f32.vlgmr.msra.gmra.mxu0 %vm166_vm1, %v1934_v47 }
0x11b2   :  { %v2007_v21 = vpop.f32.mrf.mxu0 }
0x11b3   :  { %2359 = vmatmul.mubr.msk.f32.vlgmr.msra.gmra.mxu1 %vm166_vm1, %v2007_v21 }
0x11b4   :  { %v2355_v48 = vpop.f32.mrf.mxu0 }
0x1273   :  { %v2081_v49 = vpop.f32.mrf.mxu1 }
0x1274   :  { %v2085_v50 = vadd.f32 %v2081_v49, %v1845_v18 }
0x1275   :  { %v2360_v51 = vpop.f32.mrf.mxu1 }
0x1276   :  { %v2086_v52 = vadd.f32 %v2705_v57, %v2085_v50 }
0x1278   :  { %2087 = vst [vmem:[#allocation8 + $0x8] sm:$0xff] %v2086_v52 }
0x1279   :  { %2483 = shalt.err (!%p2480_p5)
}
0x127a   :  { %2099 = dma.vmem_to_hbm [thread:$0]  %s2094_s21, 256, %s2772_s5, [#allocation4], %s2500_s23, %s2500_s23, %s2501_s24  }
0x127b   :  { %2496 = dma.done.wait [#allocation4], 256  }
0x127c   :  { %2497 = vsyncadd [#allocation4], 4294967040 }
0x127d   :  { %2103 = vsyncpa [#allocation3], 1 }
0x127e   :  { %2104 = vsyncpa [#allocation6], 1 }
0x127f   :  { %2105 = vsyncpa [#allocation4], 1 }

</bundles_post_ra>
